<compile_context>
chip_gen: v5e
topology: v5e:2x2
jax: 0.10.0
libtpu: 0.0.40
codegen_flags: <defaults>
</compile_context>

<pallas_src>
import functools

import jax
import jax.numpy as jnp
import numpy as np
from jax import lax
from jax.experimental import pallas as pl
from jax.experimental.pallas import tpu as pltpu


# ----------------------------------------------------------------------------
# helpers
# ----------------------------------------------------------------------------
def _pair(v):
    return (v, v) if isinstance(v, int) else tuple(v)


def _cdiv(a, b):
    return -(-a // b)


def _round_up(a, b):
    return _cdiv(a, b) * b


def _pick_tm(m):
    """Row-tile size: multiple of 16 (bf16 sublane pack), large to amortise the
    ~0.35 us per-grid-step overhead, but >= 2 tiles so v7x's two TensorCores
    both get work on medium problems."""
    if m <= 16:
        return 16
    return max(16, min(512, _round_up(_cdiv(m, 2), 16)))


# ----------------------------------------------------------------------------
# Pallas GEMM: (Mp, K) x (K, Np) -> (Mp, Np) f32, 1-D parallel grid over M.
# ----------------------------------------------------------------------------
def _gemm_kernel(x_ref, w_ref, o_ref):
    o_ref[...] = jnp.dot(x_ref[...], w_ref[...],
                         preferred_element_type=jnp.float32).astype(o_ref.dtype)


def _tiled_gemm(x, w, *, tm):
    mp, k = x.shape
    _, np_ = w.shape
    grid = (mp // tm,)
    flops = 2 * mp * k * np_
    # x streamed once, weight block resident (index never changes), out once.
    bytes_accessed = (mp * k * x.dtype.itemsize
                      + k * np_ * w.dtype.itemsize
                      + mp * np_ * 4)
    return pl.pallas_call(
        _gemm_kernel,
        out_shape=jax.ShapeDtypeStruct((mp, np_), jnp.float32),
        grid_spec=pltpu.PrefetchScalarGridSpec(
            num_scalar_prefetch=0,
            grid=grid,
            in_specs=[
                pl.BlockSpec((tm, k), lambda i: (i, 0)),
                pl.BlockSpec((k, np_), lambda i: (0, 0)),
            ],
            out_specs=pl.BlockSpec((tm, np_), lambda i: (i, 0)),
        ),
        compiler_params=pltpu.CompilerParams(
            dimension_semantics=("parallel",)),
        cost_estimate=pl.CostEstimate(
            flops=int(flops), transcendentals=0,
            bytes_accessed=int(bytes_accessed)),
    )(x, w)


def _gemm(x, w, *, use_pallas, tm):
    if not use_pallas:
        # Tiny problem: launch / padding overhead dominates; let XLA fuse it.
        return jnp.dot(x.astype(jnp.float32), w.astype(jnp.float32),
                       preferred_element_type=jnp.float32)
    return _tiled_gemm(x, w, tm=tm)


# ----------------------------------------------------------------------------
# Quaternion transposed convolution forward
# ----------------------------------------------------------------------------
def quaternion_transpose_conv2d(x, r_w, i_w, j_w, k_w, bias,
                                stride=1, padding=0, output_padding=0,
                                dilation=1, groups=1,
                                compute_dtype=jnp.bfloat16):
    """Forward of quaternion_transpose_conv (2-D, groups=1)."""
    if groups != 1:
        raise NotImplementedError("groups > 1 not supported")  # TODO(synk)
    N, C_in, H, W = x.shape
    in_f, out_f, kH, kW = r_w.shape
    assert C_in == 4 * in_f
    C_out = 4 * out_f
    sH, sW = _pair(stride)
    pH, pW = _pair(padding)
    opH, opW = _pair(output_padding)
    dH, dW = _pair(dilation)

    H_out = (H - 1) * sH - 2 * pH + dH * (kH - 1) + opH + 1
    W_out = (W - 1) * sW - 2 * pW + dW * (kW - 1) + opW + 1
    M_out = N * H_out * W_out
    K = kH * kW * C_in

    # --- Hamilton-product block weight, built once in the wrapper ------------
    cat_r = jnp.concatenate([r_w, -i_w, -j_w, -k_w], axis=1)
    cat_i = jnp.concatenate([i_w,  r_w, -k_w,  j_w], axis=1)
    cat_j = jnp.concatenate([j_w,  k_w,  r_w, -i_w], axis=1)
    cat_k = jnp.concatenate([k_w, -j_w,  i_w,  r_w], axis=1)
    w_blk = jnp.concatenate([cat_r, cat_i, cat_j, cat_k], axis=0)  # (C_in,C_out,kH,kW)

    # conv_transpose == correlation of the zero-inserted input with the
    # spatially flipped kernel; K-axis order is (kh, kw, c_in).
    w_gemm = jnp.transpose(jnp.flip(w_blk, axis=(2, 3)), (2, 3, 0, 1))
    w_gemm = w_gemm.reshape(K, C_out).astype(compute_dtype)

    # --- lhs-dilate + pad the input (handles negative edge padding too) ------
    lo_h = dH * (kH - 1) - pH
    lo_w = dW * (kW - 1) - pW
    x_nhwc = jnp.transpose(x, (0, 2, 3, 1)).astype(compute_dtype)   # NHWC
    x_dil = lax.pad(x_nhwc, jnp.zeros((), compute_dtype),
                    ((0, 0, 0),
                     (lo_h, lo_h + opH, sH - 1),
                     (lo_w, lo_w + opW, sW - 1),
                     (0, 0, 0)))
    # x_dil: (N, H_out + dH*(kH-1), W_out + dW*(kW-1), C_in)

    # --- im2col: kH*kW shifted contiguous slices (no strided RMW) ------------
    taps = []
    for kh in range(kH):
        for kw in range(kW):
            taps.append(x_dil[:, kh * dH: kh * dH + H_out,
                              kw * dW: kw * dW + W_out, :])
    patches = jnp.stack(taps, axis=3).reshape(M_out, K)             # (M_out, K)

    # --- pad to lane/sublane-friendly tiles -----------------------------------
    Np = _round_up(C_out, 128)            # lane-dense (unmasked) output stores
    tm = _pick_tm(M_out)
    Mp = _round_up(M_out, tm)
    if Np != C_out:
        w_gemm = jnp.pad(w_gemm, ((0, 0), (0, Np - C_out)))
    if Mp != M_out:
        patches = jnp.pad(patches, ((0, Mp - M_out), (0, 0)))

    use_pallas = M_out >= 128
    y = _gemm(patches, w_gemm, use_pallas=use_pallas, tm=tm)
    y = y[:M_out, :C_out]                                            # (M_out, C_out) f32

    if bias is not None:
        y = y + bias.astype(jnp.float32)[None, :]
    out = jnp.transpose(y.reshape(N, H_out, W_out, C_out), (0, 3, 1, 2))
    return out.astype(x.dtype)


# ----------------------------------------------------------------------------
# deterministic quaternion-style weight init (forward semantics only)
# ----------------------------------------------------------------------------
def init_quaternion_conv_weights(key, in_f, out_f, kernel_size, criterion="he"):
    """Deterministic quaternion-polar-style init for the (in_f, out_f, kH, kW)
    transpose-conv weight components.
    # TODO(synk): exact 'complexKit' init from quaternion_layers is not
    # replicated; init does not affect forward-pass semantics."""
    kH, kW = kernel_size
    fan_in, fan_out = in_f * kH * kW, out_f * kH * kW
    if criterion == "glorot":
        s = 1.0 / np.sqrt(2.0 * (fan_in + fan_out))
    else:
        s = 1.0 / np.sqrt(2.0 * fan_in)
    k1, k2, k3 = jax.random.split(key, 3)
    shape = (in_f, out_f, kH, kW)
    modulus = jnp.abs(jax.random.normal(k1, shape)) * s
    phase = jax.random.uniform(k2, shape, minval=-np.pi, maxval=np.pi)
    v = jax.random.uniform(k3, (3,) + shape, minval=-1.0, maxval=1.0)
    v = v / (jnp.sqrt(jnp.sum(v * v, axis=0, keepdims=True)) + 1e-8)
    r = modulus * jnp.cos(phase)
    i = modulus * v[0] * jnp.sin(phase)
    j = modulus * v[1] * jnp.sin(phase)
    k = modulus * v[2] * jnp.sin(phase)
    return tuple(a.astype(jnp.float32) for a in (r, i, j, k))


if __name__ == "__main__":
    key = jax.random.PRNGKey(0)
    key_x, key_w, key_b = jax.random.split(key, 3)

    # Module config: QuaternionTransposeConv2DcomplexKit(
    #   in_channels=32, out_channels=32, kernel_size=3, stride=2,
    #   padding=1, output_padding=1, dilation=1, bias=True, rotation=False)
    in_channels, out_channels, kernel_size = 32, 32, 3
    stride, padding, output_padding, dilation = 2, 1, 1, 1
    in_f, out_f = in_channels // 4, out_channels // 4
    kH = kW = kernel_size

    N, H, W = 2, 16, 16
    x = jax.random.normal(key_x, (N, in_channels, H, W), dtype=jnp.float32)
    r_w, i_w, j_w, k_w = init_quaternion_conv_weights(key_w, in_f, out_f, (kH, kW))
    # reset_parameters() zeroes the bias; a non-zero bias exercises the add.
    bias = 0.1 * jax.random.normal(key_b, (out_channels,), dtype=jnp.float32)

    # bf16 is the kernel's operand dtype; pre-round the operands so the pure
    # XLA reference below sees exactly the same values.
    xb = x.astype(jnp.bfloat16).astype(jnp.float32)
    rb, ib, jb, kb = (w.astype(jnp.bfloat16).astype(jnp.float32)
                      for w in (r_w, i_w, j_w, k_w))

    conv = jax.jit(functools.partial(
        quaternion_transpose_conv2d, stride=stride, padding=padding,
        output_padding=output_padding, dilation=dilation, groups=1,
        compute_dtype=jnp.bfloat16))
    out = jax.block_until_ready(conv(xb, rb, ib, jb, kb, bias))

    # --- reference: PyTorch quaternion_transpose_conv semantics -------------
    cat_r = jnp.concatenate([rb, -ib, -jb, -kb], axis=1)
    cat_i = jnp.concatenate([ib,  rb, -kb,  jb], axis=1)
    cat_j = jnp.concatenate([jb,  kb,  rb, -ib], axis=1)
    cat_k = jnp.concatenate([kb, -jb,  ib,  rb], axis=1)
    W_full = jnp.concatenate([cat_r, cat_i, cat_j, cat_k], axis=0)  # (C_in,C_out,kH,kW)
    lo_h = dilation * (kH - 1) - padding
    lo_w = dilation * (kW - 1) - padding
    ref = lax.conv_general_dilated(
        xb, jnp.flip(W_full, axis=(2, 3)),
        window_strides=(1, 1),
        padding=((lo_h, lo_h + output_padding), (lo_w, lo_w + output_padding)),
        lhs_dilation=(stride, stride), rhs_dilation=(dilation, dilation),
        dimension_numbers=("NCHW", "IOHW", "NCHW"),
        precision=lax.Precision.HIGHEST)
    ref = ref + bias[None, :, None, None]

    H_out = (H - 1) * stride - 2 * padding + dilation * (kH - 1) + output_padding + 1
    assert out.shape == (N, out_channels, H_out, H_out), out.shape
    np.testing.assert_allclose(np.asarray(out), np.asarray(ref),
                               rtol=2e-3, atol=2e-3)
    print("KERNEL_OK")
</pallas_src>

<mosaic_0001>
module attributes {stable_mosaic.version = 11 : i64} {
  func.func @_gemm_kernel(%arg0: i32, %arg1: memref<512x288xbf16, #tpu.memory_space<vmem>>, %arg2: memref<288x128xbf16, #tpu.memory_space<vmem>>, %arg3: memref<512x128xf32, #tpu.memory_space<vmem>>) attributes {dimension_semantics = [#tpu.dimension_semantics<parallel>], iteration_bounds = array<i64: 4>, scalar_prefetch = 0 : i64, scratch_operands = 0 : i64, tpu.core_type = #tpu.core_type<tc>, window_params = [{transform_indices = @transform_0, window_bounds = array<i64: 512, 288>}, {pipeline_mode = #tpu.pipeline_mode<synchronous>, transform_indices = @transform_1, window_bounds = array<i64: 288, 128>}, {transform_indices = @transform_2, window_bounds = array<i64: 512, 128>}]} {
    %c0 = arith.constant 0 : index
    %c0_0 = arith.constant 0 : index
    %0 = vector.load %arg1[%c0, %c0_0] : memref<512x288xbf16, #tpu.memory_space<vmem>>, vector<512x288xbf16>
    %c0_1 = arith.constant 0 : index
    %c0_2 = arith.constant 0 : index
    %1 = vector.load %arg2[%c0_1, %c0_2] : memref<288x128xbf16, #tpu.memory_space<vmem>>, vector<288x128xbf16>
    %cst = arith.constant dense<0.000000e+00> : vector<512x128xf32>
    %2 = tpu.matmul %0, %1, %cst {dimension_numbers = #tpu.dot_dimension_numbers<[1], [0], [0], [1], [0, 0, 1, 1], [], []>} : vector<512x288xbf16>, vector<288x128xbf16>, vector<512x128xf32> -> vector<512x128xf32>
    %c0_3 = arith.constant 0 : index
    %c0_4 = arith.constant 0 : index
    %3 = vector.load %arg3[%c0_3, %c0_4] : memref<512x128xf32, #tpu.memory_space<vmem>>, vector<512x128xf32>
    tpu.vector_store %arg3[%c0_3, %c0_4], %2 {strides = array<i32>} : memref<512x128xf32, #tpu.memory_space<vmem>>, vector<512x128xf32>,
    return
  }
  func.func @transform_0(%arg0: i32) -> (i32, i32) {
    %c0_i32 = arith.constant 0 : i32
    %c0_i32_0 = arith.constant 0 : i32
    return %arg0, %c0_i32 : i32, i32
  }
  func.func @transform_1(%arg0: i32) -> (i32, i32) {
    %c0_i32 = arith.constant 0 : i32
    %c0_i32_0 = arith.constant 0 : i32
    %c0_i32_1 = arith.constant 0 : i32
    return %c0_i32, %c0_i32_0 : i32, i32
  }
  func.func @transform_2(%arg0: i32) -> (i32, i32) {
    %c0_i32 = arith.constant 0 : i32
    %c0_i32_0 = arith.constant 0 : i32
    return %arg0, %c0_i32 : i32, i32
  }
}

</mosaic_0001>

<bundles_post_ra>
// kernel: neg.6
= control target key start
LH: loop header
LB: loop body
LE: loop exit
PB: predicated region body
PF: predicated region fallthrough
CT: control target
= control target key end

     0   :  { %s161_s0 = inlined_call_operand.vmem [shape: f32[8,8,3,3], index: 0, kind: input, shape index: {}]   ;;  %s162_s1 = inlined_call_operand.vmem [shape: bf16[8,8,3,3], index: 1, kind: output, shape index: {}]  }
   0x1   :  { %v2_v0 = vld [vmem:[%s161_s0] sm:$0xff]  ;;  %v81_v1 = vld [vmem:[%s161_s0 + $0x18] sm:$0xff]  ;;  %v83_v2 = vld [vmem:[%s161_s0 + $0x30] sm:$0xff] }
   0x2   :  { %v5_v3 = vxor.u32 2147483648, %v2_v0  ;;  %v13_v4 = vxor.u32 2147483648, %v81_v1  ;;  %v22_v5 = vxor.u32 2147483648, %v83_v2  ;;  %v85_v6 = vld [vmem:[%s161_s0 + $0x8] sm:$0xff]  ;;  %v87_v7 = vld [vmem:[%s161_s0 + $0x20] sm:$0xff]  ;;  %v89_v8 = vld [vmem:[%s161_s0 + $0x38] sm:$0xff] }
   0x3   :  { %v31_v9 = vxor.u32 2147483648, %v85_v6  ;;  %v40_v10 = vxor.u32 2147483648, %v87_v7  ;;  %v49_v11 = vxor.u32 2147483648, %v89_v8  ;;  %v91_v12 = vld [vmem:[%s161_s0 + $0x10] sm:$0xff]  ;;  %v93_v13 = vld [vmem:[%s161_s0 + $0x28] sm:$0xff]  ;;  %v95_v14 = vld [vmem:[%s161_s0 + $0x40] sm:$0xff] }
   0x4   :  { %v7_v15 = vpack.c.bf16 0.0, %v5_v3  ;;  %v16_v16 = vpack.c.bf16 0.0, %v13_v4  ;;  %v25_v17 = vpack.c.bf16 0.0, %v22_v5  ;;  %v58_v18 = vxor.u32 2147483648, %v91_v12 }
   0x5   :  { %v34_v19 = vpack.c.bf16 0.0, %v31_v9  ;;  %v67_v20 = vxor.u32 2147483648, %v93_v13  ;;  %v43_v21 = vpack.c.bf16 0.0, %v40_v10  ;;  %v76_v22 = vxor.u32 2147483648, %v95_v14 }
   0x6   :  { %8 = vst [vmem:[%s162_s1] sm:$0xf] %v7_v15  ;;  %v52_v23 = vpack.c.bf16 0.0, %v49_v11  ;;  %v61_v24 = vpack.c.bf16 0.0, %v58_v18 }
   0x7   :  { %82 = vst [vmem:[%s162_s1 + $0xc] sm:$0xf] %v16_v16  ;;  %v70_v25 = vpack.c.bf16 0.0, %v67_v20  ;;  %v79_v26 = vpack.c.bf16 0.0, %v76_v22 }
   0x8   :  { %84 = vst [vmem:[%s162_s1 + $0x18] sm:$0xf] %v25_v17 }
   0x9   :  { %86 = vst [vmem:[%s162_s1 + $0x4] sm:$0xf] %v34_v19 }
   0xa   :  { %88 = vst [vmem:[%s162_s1 + $0x10] sm:$0xf] %v43_v21 }
   0xb   :  { %90 = vst [vmem:[%s162_s1 + $0x1c] sm:$0xf] %v52_v23 }
   0xc   :  { %92 = vst [vmem:[%s162_s1 + $0x8] sm:$0xf] %v61_v24 }
   0xd   :  { %94 = vst [vmem:[%s162_s1 + $0x14] sm:$0xf] %v70_v25 }
   0xe   :  { %96 = vst [vmem:[%s162_s1 + $0x20] sm:$0xf] %v79_v26 }

// kernel: quaternion_transpose_conv2d.1
= control target key start
LH: loop header
LB: loop body
LE: loop exit
PB: predicated region body
PF: predicated region fallthrough
CT: control target
= control target key end

     0   :  { %s2290_s9 = smov 0   ;;  %s2765_s0 = inlined_call_operand.vmem [shape: bf16[2048,288], index: 0, kind: input, shape index: {}]   ;;  %s2766_s1 = inlined_call_operand.vmem [shape: bf16[288,128], index: 1, kind: input, shape index: {}]   ;;  %s2767_s2 = inlined_call_operand.vmem [shape: f32[2048,128], index: 2, kind: output, shape index: {}]  }
   0x1 LB: > { %s1627_s10 = sadd.s32 4294967295, %s2273_s9   ;;  %p1631_p0 = scmp.ge.s32.totalorder %s2273_s9, 1  ;;  %s2273_s9 = sphi %s2290_s9, %s12_s9  }
   0x2   : > { %p114_p1 = scmp.lt.s32.totalorder %s2273_s9, 5 }
   0x4   : > { %p115_p2 = pnand %p1631_p0, %p114_p1 }
   0x5   : > { %s1632_s17 = sshll.u32 (!%p115_p2), %s1627_s10, 6 }
   0x6   : > { %118 = sbr.rel (%p115_p2) target bundleno = 564 (0x234), region = 28  ;;  %p138_p3 = scmp.lt.s32.totalorder (!%p115_p2), %s1632_s17, 255 }
   0xb   : > { %v2229_v0 = vld [vmem:[%s2766_s1 + $0x38] sm:$0xff]  ;;  %v2309_v2 = vld [vmem:[%s2766_s1 + $0x88] sm:$0xff]  ;;  %v2228_v3 = vld [vmem:[%s2766_s1 + $0x30] sm:$0xff]  ;;  %s2769_s17 = smov (!%p138_p3, %s1632_s17), 255  ;;  %vm903_vm0 = vcmask 261120  }
   0xc   : > { %v2304_v1 = vld [vmem:[%s2766_s1 + $0x78] sm:$0xff]  ;;  %1000 = vmatpush.bf16.msra.mxu0 %v2229_v0  ;;  %2240 = vmatpush.bf16.msra.mxu3 %v2229_v0  ;;  %v2236_v4 = vld [vmem:[%s2766_s1 + $0x70] sm:$0xff]  ;;  %v2322_v5 = vld [vmem:[%s2766_s1 + $0x80] sm:$0xff]  ;;  %s2258_s24 = smul.u32 12, %s2769_s17  ;;  %s1635_s26 = sshll.u32 %s2769_s17, 3 }
   0xd   : > { %1169 = vmatpush.bf16.msra.mxu1 %v2304_v1  ;;  %1344 = vmatpush.bf16.msra.mxu2 %v2309_v2  ;;  %v2227_v6 = vld [vmem:[%s2766_s1 + $0x28] sm:$0xff]  ;;  %v2226_v11 = vld [vmem:[%s2766_s1 + $0x20] sm:$0xff]  ;;  %v2225_v13 = vld [vmem:[%s2766_s1 + $0x18] sm:$0xff]  ;;  %s2460_s29 = scalar_lea.vmem %s2767_s2, %s1635_s26 }
   0xe   : > { %v2235_v7 = vld [vmem:[%s2766_s1 + $0x68] sm:$0xff]  ;;  %s2337_s3 = scalar_lea.vmem %s2765_s0, %s2258_s24  ;;  %v2234_v12 = vld [vmem:[%s2766_s1 + $0x60] sm:$0xff]  ;;  %v2233_v14 = vld [vmem:[%s2766_s1 + $0x58] sm:$0xff] }
   0xf   : > { %v1646_v8 = vld [vmem:[%s2337_s3 + $0x8] sm:$0xf]  ;;  %v2128_v9 = vld [vmem:[%s2337_s3 + $0x10] sm:$0xf0]  ;;  %v1658_v17 = vld [vmem:[%s2337_s3 + $0x20] sm:$0xf] }
  0x10   : > { %1001 = vmatpush.bf16.msra.mxu0 %v2228_v3  ;;  %2241 = vmatpush.bf16.msra.mxu3 %v2228_v3  ;;  %v1647_v10 = vor.u32 %v2128_v9, %v1646_v8  ;;  %v2224_v15 = vld [vmem:[%s2766_s1 + $0x10] sm:$0xff]  ;;  %v2131_v18 = vld [vmem:[%s2337_s3 + $0x28] sm:$0xf0]  ;;  %v2222_v22 = vld [vmem:[%s2766_s1] sm:$0xff] }
  0x11   : > { %1170 = vmatpush.bf16.msra.mxu1 %v2236_v4  ;;  %1345 = vmatpush.bf16.msra.mxu2 %v2322_v5  ;;  %v2232_v16 = vld [vmem:[%s2766_s1 + $0x50] sm:$0xff]  ;;  %v2223_v19 = vld [vmem:[%s2766_s1 + $0x8] sm:$0xff]  ;;  %v1659_v21 = vor.u32 %v2131_v18, %v1658_v17  ;;  %v1638_v23 = vld [vmem:[%s2337_s3] sm:$0xf] }
  0x12   : > { %v2231_v20 = vld [vmem:[%s2766_s1 + $0x48] sm:$0xff]  ;;  %v1926_v25 = vld [vmem:[%s2337_s3 + $0x240] sm:$0xf]  ;;  %v2126_v28 = vld [vmem:[%s2337_s3 + $0x4] sm:$0xf] }
  0x13   : > { %v2127_v24 = vld [vmem:[%s2337_s3 + $0x8] sm:$0xf0]  ;;  %v2230_v27 = vld [vmem:[%s2766_s1 + $0x40] sm:$0xff]  ;;  %v1640_v29 = vld [vmem:[%s2337_s3 + $0xc] sm:$0xf0] }
  0x14   : > { %1002 = vmatpush.bf16.msra.mxu0 %v2227_v6  ;;  %2242 = vmatpush.bf16.msra.mxu3 %v2227_v6  ;;  %v2199_v26 = vld [vmem:[%s2337_s3 + $0x248] sm:$0xf0]  ;;  %v1639_v30 = vor.u32 %v2127_v24, %v1638_v23  ;;  %v1643_v32 = vor.u32 %v2126_v28, %v1640_v29  ;;  %v1670_v33 = vld [vmem:[%s2337_s3 + $0x38] sm:$0xf]  ;;  %v2134_v34 = vld [vmem:[%s2337_s3 + $0x40] sm:$0xf0] }
  0x15   : > { %1171 = vmatpush.bf16.msra.mxu1 %v2235_v7  ;;  %2092 = vmatmul.msk.bf16.vlgmr.msra.gmra.mxu2 %vm903_vm0, %v1647_v10  ;;  %v1927_v31 = vor.u32 %v2199_v26, %v1926_v25  ;;  %v1671_v35 = vor.u32 %v2134_v34, %v1670_v33  ;;  %v1650_v36 = vld [vmem:[%s2337_s3 + $0x18] sm:$0xf]  ;;  %v2130_v37 = vld [vmem:[%s2337_s3 + $0x20] sm:$0xf0]  ;;  %v2129_v40 = vld [vmem:[%s2337_s3 + $0x1c] sm:$0xf] }
  0x16   : > { %v1938_v38 = vld [vmem:[%s2337_s3 + $0x258] sm:$0xf]  ;;  %v2202_v39 = vld [vmem:[%s2337_s3 + $0x260] sm:$0xf0]  ;;  %v1652_v41 = vld [vmem:[%s2337_s3 + $0x24] sm:$0xf0]  ;;  %v1651_v42 = vor.u32 %v2130_v37, %v1650_v36 }
  0x17   : > { %v1939_v43 = vor.u32 %v2202_v39, %v1938_v38  ;;  %v1655_v44 = vor.u32 %v2129_v40, %v1652_v41  ;;  %v1682_v45 = vld [vmem:[%s2337_s3 + $0x50] sm:$0xf]  ;;  %v2137_v46 = vld [vmem:[%s2337_s3 + $0x58] sm:$0xf0]  ;;  %v2132_v52 = vld [vmem:[%s2337_s3 + $0x34] sm:$0xf] }
  0x18   : > { %1003 = vmatpush.bf16.msra.mxu0 %v2226_v11  ;;  %2243 = vmatpush.bf16.msra.mxu3 %v2226_v11  ;;  %v1683_v47 = vor.u32 %v2137_v46, %v1682_v45  ;;  %v1662_v48 = vld [vmem:[%s2337_s3 + $0x30] sm:$0xf]  ;;  %v2133_v49 = vld [vmem:[%s2337_s3 + $0x38] sm:$0xf0]  ;;  %v1664_v53 = vld [vmem:[%s2337_s3 + $0x3c] sm:$0xf0] }
  0x19   : > { %1172 = vmatpush.bf16.msra.mxu1 %v2234_v12  ;;  %v1950_v50 = vld [vmem:[%s2337_s3 + $0x270] sm:$0xf]  ;;  %v2205_v51 = vld [vmem:[%s2337_s3 + $0x278] sm:$0xf0]  ;;  %v1663_v54 = vor.u32 %v2133_v49, %v1662_v48  ;;  %v1667_v56 = vor.u32 %v2132_v52, %v1664_v53  ;;  %v1694_v57 = vld [vmem:[%s2337_s3 + $0x68] sm:$0xf] }
  0x1a   : > { %v1951_v55 = vor.u32 %v2205_v51, %v1950_v50  ;;  %v2140_v58 = vld [vmem:[%s2337_s3 + $0x70] sm:$0xf0]  ;;  %v1674_v60 = vld [vmem:[%s2337_s3 + $0x48] sm:$0xf]  ;;  %v2135_v0 = vld [vmem:[%s2337_s3 + $0x4c] sm:$0xf] }
  0x1b   : > { %v1695_v59 = vor.u32 %v2140_v58, %v1694_v57  ;;  %v2136_v61 = vld [vmem:[%s2337_s3 + $0x50] sm:$0xf0]  ;;  %v1962_v62 = vld [vmem:[%s2337_s3 + $0x288] sm:$0xf]  ;;  %v2143_v6 = vld [vmem:[%s2337_s3 + $0x88] sm:$0xf0] }
  0x1c   : > { %1004 = vmatpush.bf16.msra.mxu0 %v2225_v13  ;;  %2244 = vmatpush.bf16.msra.mxu3 %v2225_v13  ;;  %v2208_v63 = vld [vmem:[%s2337_s3 + $0x290] sm:$0xf0]  ;;  %v1686_v8 = vld [vmem:[%s2337_s3 + $0x60] sm:$0xf]  ;;  %v2139_v9 = vld [vmem:[%s2337_s3 + $0x68] sm:$0xf0] }
  0x1d   : > { %1173 = vmatpush.bf16.msra.mxu1 %v2233_v14  ;;  %v1963_v3 = vor.u32 %v2208_v63, %v1962_v62  ;;  %v1974_v10 = vld [vmem:[%s2337_s3 + $0x2a0] sm:$0xf]  ;;  %v2211_v11 = vld [vmem:[%s2337_s3 + $0x2a8] sm:$0xf0]  ;;  %v1688_v13 = vld [vmem:[%s2337_s3 + $0x6c] sm:$0xf0] }
  0x1e   : > { %v1718_v17 = vld [vmem:[%s2337_s3 + $0x98] sm:$0xf]  ;;  %v2146_v18 = vld [vmem:[%s2337_s3 + $0xa0] sm:$0xf0]  ;;  %v2141_v24 = vld [vmem:[%s2337_s3 + $0x7c] sm:$0xf] }
  0x1f   : > { %v2214_v23 = vld [vmem:[%s2337_s3 + $0x2c0] sm:$0xf0]  ;;  %v1700_v25 = vld [vmem:[%s2337_s3 + $0x84] sm:$0xf0]  ;;  %v1730_v29 = vld [vmem:[%s2337_s3 + $0xb0] sm:$0xf] }
  0x20   : > { %1005 = vmatpush.bf16.msra.mxu0 %v2224_v15  ;;  %2245 = vmatpush.bf16.msra.mxu3 %v2224_v15  ;;  %v1975_v15 = vor.u32 %v2211_v11, %v1974_v10  ;;  %v1703_v28 = vor.u32 %v2141_v24, %v1700_v25  ;;  %v2145_v33 = vld [vmem:[%s2337_s3 + $0x98] sm:$0xf0]  ;;  %v1998_v34 = vld [vmem:[%s2337_s3 + $0x2d0] sm:$0xf]  ;;  %v2144_v36 = vld [vmem:[%s2337_s3 + $0x94] sm:$0xf] }
  0x21   : > { %1174 = vmatpush.bf16.msra.mxu1 %v2232_v16  ;;  %v1712_v37 = vld [vmem:[%s2337_s3 + $0x9c] sm:$0xf0]  ;;  %v1742_v41 = vld [vmem:[%s2337_s3 + $0xc8] sm:$0xf]  ;;  %v2148_v45 = vld [vmem:[%s2337_s3 + $0xb0] sm:$0xf0] }
  0x22   : > { %v1715_v40 = vor.u32 %v2144_v36, %v1712_v37  ;;  %v2010_v46 = vld [vmem:[%s2337_s3 + $0x2e8] sm:$0xf]  ;;  %v2147_v48 = vld [vmem:[%s2337_s3 + $0xac] sm:$0xf]  ;;  %v1724_v49 = vld [vmem:[%s2337_s3 + $0xb4] sm:$0xf0] }
  0x23   : > { %v1727_v53 = vor.u32 %v2147_v48, %v1724_v49  ;;  %v1734_v58 = vld [vmem:[%s2337_s3 + $0xc0] sm:$0xf]  ;;  %v2150_v62 = vld [vmem:[%s2337_s3 + $0xc4] sm:$0xf]  ;;  %v1736_v63 = vld [vmem:[%s2337_s3 + $0xcc] sm:$0xf0] }
  0x24   : > { %1006 = vmatpush.bf16.msra.mxu0 %v2223_v19  ;;  %2246 = vmatpush.bf16.msra.mxu3 %v2223_v19  ;;  %v1719_v19 = vor.u32 %v2146_v18, %v1718_v17  ;;  %v2158_v10 = vld [vmem:[%s2337_s3 + $0x100] sm:$0xf0] }
  0x25   : > { %1175 = vmatpush.bf16.msra.mxu1 %v2231_v20  ;;  %2093 = vmatmul.msk.bf16.gmra.mxu2 %vm903_vm0, %v1659_v21  ;;  %v2142_v21 = vld [vmem:[%s2337_s3 + $0x80] sm:$0xf0] }
  0x26   : > { %v2154_v18 = vld [vmem:[%s2337_s3 + $0xe0] sm:$0xf0] }
  0x28   : > { %1007 = vmatpush.bf16.msra.mxu0 %v2222_v22  ;;  %2247 = vmatpush.bf16.msra.mxu3 %v2222_v22  ;;  %v1986_v22 = vld [vmem:[%s2337_s3 + $0x2b8] sm:$0xf] }
  0x29   : > { %1176 = vmatpush.bf16.msra.mxu1 %v2230_v27 }
  0x2b   : > { %1008 = vmatmul.bf16.vlgmr.msra.gmra.mxu0 %v1639_v30  ;;  %1128 = vmatmul.bf16.vlgmr.msra.gmra.mxu3 %v1927_v31  ;;  %v2149_v30 = vld [vmem:[%s2337_s3 + $0xb8] sm:$0xf0] }
  0x2c   : > { %2248 = vmatpush.bf16.msrb.mxu3 %v2304_v1  ;;  %1177 = vmatmul.bf16.vlgmr.msra.gmra.mxu1 %v1643_v32  ;;  %v1676_v1 = vld [vmem:[%s2337_s3 + $0x54] sm:$0xf0]  ;;  %v1731_v31 = vor.u32 %v2149_v30, %v1730_v29  ;;  %v1710_v32 = vld [vmem:[%s2337_s3 + $0x90] sm:$0xf] }
  0x2d   : > { %v1711_v38 = vor.u32 %v2145_v33, %v1710_v32  ;;  %v1778_v33 = vld [vmem:[%s2337_s3 + $0x110] sm:$0xf] }
  0x30   : > { %2249 = vmatpush.bf16.msrb.mxu3 %v2236_v4  ;;  %v1679_v4 = vor.u32 %v2135_v0, %v1676_v1 }
  0x34   : > { %2250 = vmatpush.bf16.msrb.mxu3 %v2235_v7 }
  0x35   : > { %2094 = vmatmul.msk.bf16.gmra.mxu2 %vm903_vm0, %v1671_v35  ;;  %v2217_v35 = vld [vmem:[%s2337_s3 + $0x2d8] sm:$0xf0] }
  0x36   : > { %v1999_v39 = vor.u32 %v2217_v35, %v1998_v34  ;;  %v2161_v34 = vld [vmem:[%s2337_s3 + $0x118] sm:$0xf0] }
  0x38   : > { %2251 = vmatpush.bf16.msrb.mxu3 %v2234_v12  ;;  %v2138_v12 = vld [vmem:[%s2337_s3 + $0x64] sm:$0xf] }
  0x3b   : > { %1013 = vmatmul.bf16.gmra.mxu0 %v1651_v42  ;;  %1133 = vmatmul.bf16.gmra.mxu3 %v1939_v43  ;;  %v2152_v42 = vld [vmem:[%s2337_s3 + $0xd0] sm:$0xf0] }
  0x3c   : > { %2252 = vmatpush.bf16.msrb.mxu3 %v2233_v14  ;;  %1182 = vmatmul.bf16.gmra.mxu1 %v1655_v44  ;;  %v1687_v14 = vor.u32 %v2139_v9, %v1686_v8  ;;  %v1743_v43 = vor.u32 %v2152_v42, %v1742_v41  ;;  %v1722_v44 = vld [vmem:[%s2337_s3 + $0xa8] sm:$0xf]  ;;  %v1766_v9 = vld [vmem:[%s2337_s3 + $0xf8] sm:$0xf]  ;;  %v2157_v42 = vld [vmem:[%s2337_s3 + $0xf8] sm:$0xf0] }
  0x3d   : > { %v1723_v50 = vor.u32 %v2148_v45, %v1722_v44  ;;  %v1952_v44 = vld [vmem:[%s2337_s3 + $0x27c] sm:$0xf0]  ;;  %v2156_v45 = vld [vmem:[%s2337_s3 + $0xf4] sm:$0xf] }
  0x40   : > { %2253 = vmatpush.bf16.msrb.mxu3 %v2232_v16  ;;  %v1691_v16 = vor.u32 %v2138_v12, %v1688_v13 }
  0x44   : > { %2254 = vmatpush.bf16.msrb.mxu3 %v2231_v20  ;;  %v1698_v20 = vld [vmem:[%s2337_s3 + $0x78] sm:$0xf] }
  0x45   : > { %2095 = vmatmul.msk.bf16.gmra.mxu2 %vm903_vm0, %v1683_v47  ;;  %v1699_v26 = vor.u32 %v2142_v21, %v1698_v20  ;;  %v2220_v47 = vld [vmem:[%s2337_s3 + $0x2f0] sm:$0xf0]  ;;  %v1940_v20 = vld [vmem:[%s2337_s3 + $0x264] sm:$0xf0]  ;;  %v2153_v21 = vld [vmem:[%s2337_s3 + $0xdc] sm:$0xf] }
  0x46   : > { %v2011_v51 = vor.u32 %v2220_v47, %v2010_v46  ;;  %v1760_v46 = vld [vmem:[%s2337_s3 + $0xfc] sm:$0xf0] }
  0x48   : > { %2255 = vmatpush.bf16.msrb.mxu3 %v2230_v27  ;;  %v1987_v27 = vor.u32 %v2214_v23, %v1986_v22  ;;  %v1748_v22 = vld [vmem:[%s2337_s3 + $0xe4] sm:$0xf0] }
  0x4b   : > { %1018 = vmatmul.bf16.gmra.mxu0 %v1663_v54  ;;  %1138 = vmatmul.bf16.gmra.mxu3 %v1951_v55  ;;  %v1754_v54 = vld [vmem:[%s2337_s3 + $0xe0] sm:$0xf]  ;;  %v2155_v55 = vld [vmem:[%s2337_s3 + $0xe8] sm:$0xf0] }
  0x4c   : > { %2256 = vmatpush.bf16.msra.mxu3 %v2309_v2  ;;  %1187 = vmatmul.bf16.gmra.mxu1 %v1667_v56  ;;  %v1675_v2 = vor.u32 %v2136_v61, %v1674_v60  ;;  %v1755_v57 = vor.u32 %v2155_v55, %v1754_v54  ;;  %v2198_v60 = vld [vmem:[%s2337_s3 + $0x244] sm:$0xf]  ;;  %v1928_v61 = vld [vmem:[%s2337_s3 + $0x24c] sm:$0xf0] }
  0x4d   : > { %v1931_v1 = vor.u32 %v2198_v60, %v1928_v61 }
  0x50   : > { %2257 = vmatpush.bf16.msra.mxu3 %v2322_v5  ;;  %v1706_v5 = vld [vmem:[%s2337_s3 + $0x80] sm:$0xf] }
  0x51   : > { %v1707_v7 = vor.u32 %v2143_v6, %v1706_v5 }
  0x55   : > { %2096 = vmatmul.msk.bf16.gmra.mxu2 %vm903_vm0, %v1695_v59  ;;  %v2151_v59 = vld [vmem:[%s2337_s3 + $0xc8] sm:$0xf0] }
  0x56   : > { %v1735_v0 = vor.u32 %v2151_v59, %v1734_v58  ;;  %v2164_v58 = vld [vmem:[%s2337_s3 + $0x130] sm:$0xf0] }
  0x5b   : > { %1023 = vmatmul.bf16.gmra.mxu0 %v1675_v2  ;;  %1143 = vmatmul.bf16.gmra.mxu3 %v1963_v3 }
  0x5c   : > { %1192 = vmatmul.bf16.gmra.mxu1 %v1679_v4  ;;  %v1739_v4 = vor.u32 %v2150_v62, %v1736_v63 }
  0x65   : > { %2097 = vmatmul.msk.bf16.gmra.mxu2 %vm903_vm0, %v1707_v7 }
  0x6b   : > { %1028 = vmatmul.bf16.gmra.mxu0 %v1687_v14  ;;  %1148 = vmatmul.bf16.gmra.mxu3 %v1975_v15  ;;  %v1767_v14 = vor.u32 %v2158_v10, %v1766_v9 }
  0x6c   : > { %1197 = vmatmul.bf16.gmra.mxu1 %v1691_v16  ;;  %v1746_v16 = vld [vmem:[%s2337_s3 + $0xd8] sm:$0xf] }
  0x6d   : > { %v1747_v24 = vor.u32 %v2154_v18, %v1746_v16  ;;  %v1802_v18 = vld [vmem:[%s2337_s3 + $0x140] sm:$0xf] }
  0x75   : > { %2098 = vmatmul.msk.bf16.gmra.mxu2 %vm903_vm0, %v1719_v19  ;;  %v2201_v19 = vld [vmem:[%s2337_s3 + $0x25c] sm:$0xf] }
  0x76   : > { %v1943_v25 = vor.u32 %v2201_v19, %v1940_v20  ;;  %v2167_v19 = vld [vmem:[%s2337_s3 + $0x148] sm:$0xf0] }
  0x7b   : > { %1033 = vmatmul.bf16.gmra.mxu0 %v1699_v26  ;;  %1153 = vmatmul.bf16.gmra.mxu3 %v1987_v27 }
  0x7c   : > { %1202 = vmatmul.bf16.gmra.mxu1 %v1703_v28  ;;  %v1751_v28 = vor.u32 %v2153_v21, %v1748_v22 }
  0x85   : > { %2099 = vmatmul.msk.bf16.gmra.mxu2 %vm903_vm0, %v1731_v31 }
  0x8b   : > { %1038 = vmatmul.bf16.gmra.mxu0 %v1711_v38  ;;  %1158 = vmatmul.bf16.gmra.mxu3 %v1999_v39  ;;  %v1779_v38 = vor.u32 %v2161_v34, %v1778_v33  ;;  %v1784_v33 = vld [vmem:[%s2337_s3 + $0x12c] sm:$0xf0] }
  0x8c   : > { %1207 = vmatmul.bf16.gmra.mxu1 %v1715_v40  ;;  %v1758_v40 = vld [vmem:[%s2337_s3 + $0xf0] sm:$0xf] }
  0x8d   : > { %v1759_v48 = vor.u32 %v2157_v42, %v1758_v40 }
  0x95   : > { %2100 = vmatmul.msk.bf16.gmra.mxu2 %vm903_vm0, %v1743_v43  ;;  %v2204_v43 = vld [vmem:[%s2337_s3 + $0x274] sm:$0xf] }
  0x96   : > { %v1955_v49 = vor.u32 %v2204_v43, %v1952_v44  ;;  %v1814_v44 = vld [vmem:[%s2337_s3 + $0x158] sm:$0xf] }
  0x98   : > { %v1347_v52 = vpop.f32.mrf.mxu2 }
  0x9b   : > { %1043 = vmatmul.bf16.gmra.mxu0 %v1723_v50  ;;  %1163 = vmatmul.bf16.gmra.mxu3 %v2011_v51 }
  0x9c   : > { %1212 = vmatmul.bf16.gmra.mxu1 %v1727_v53 }
  0xa0   : > { %v1349_v56 = vpop.f32.mrf.mxu2 }
  0xa5   : > { %2101 = vmatmul.msk.bf16.gmra.mxu2 %vm903_vm0, %v1755_v57  ;;  %v1790_v57 = vld [vmem:[%s2337_s3 + $0x128] sm:$0xf] }
  0xa6   : > { %v1791_v62 = vor.u32 %v2164_v58, %v1790_v57  ;;  %v1988_v57 = vld [vmem:[%s2337_s3 + $0x2c4] sm:$0xf0]  ;;  %v2165_v58 = vld [vmem:[%s2337_s3 + $0x13c] sm:$0xf] }
  0xa8   : > { %v1352_v2 = vpop.f32.mrf.mxu2  ;;  %v1009_v3 = vpop.f32.mrf.mxu0 }
  0xa9   : > { %v1178_v5 = vpop.f32.mrf.mxu1 }
  0xaa   : > { %v1179_v6 = vadd.f32 %v1178_v5, %v1009_v3  ;;  %v2207_v3 = vld [vmem:[%s2337_s3 + $0x28c] sm:$0xf] }
  0xab   : > { %1048 = vmatmul.bf16.gmra.mxu0 %v1735_v0  ;;  %1297 = vmatmul.bf16.vlgmr.msrb.gmra.mxu3 %v1931_v1  ;;  %v1770_v0 = vld [vmem:[%s2337_s3 + $0x108] sm:$0xf]  ;;  %v2159_v5 = vld [vmem:[%s2337_s3 + $0x10c] sm:$0xf] }
  0xac   : > { %v1348_v7 = vadd.f32 %v1347_v52, %v1179_v6  ;;  %1217 = vmatmul.bf16.gmra.mxu1 %v1739_v4  ;;  %v1763_v52 = vor.u32 %v2156_v45, %v1760_v46  ;;  %v1964_v4 = vld [vmem:[%s2337_s3 + $0x294] sm:$0xf0]  ;;  %v2170_v45 = vld [vmem:[%s2337_s3 + $0x160] sm:$0xf0] }
  0xad   : > { %v1772_v6 = vld [vmem:[%s2337_s3 + $0x114] sm:$0xf0]  ;;  %v1967_v10 = vor.u32 %v2207_v3, %v1964_v4 }
  0xae   : > { %1507 = vst [vmem:[%s2460_s29] sm:$0xff] %v1348_v7  ;;  %v2463_v8 = vpop.f32.mrf.mxu3 }
  0xb0   : > { %v1354_v11 = vpop.f32.mrf.mxu2  ;;  %v1011_v12 = vpop.f32.mrf.mxu0 }
  0xb1   : > { %v1180_v13 = vpop.f32.mrf.mxu1 }
  0xb2   : > { %v1181_v15 = vadd.f32 %v1180_v13, %v1011_v12  ;;  %v1775_v13 = vor.u32 %v2159_v5, %v1772_v6  ;;  %v1826_v6 = vld [vmem:[%s2337_s3 + $0x170] sm:$0xf] }
  0xb4   : > { %v1350_v17 = vadd.f32 %v1349_v56, %v1181_v15 }
  0xb5   : > { %2102 = vmatmul.msk.bf16.gmra.mxu2 %vm903_vm0, %v1767_v14 }
  0xb6   : > { %1508 = vst [vmem:[%s2460_s29 + $0x8] sm:$0xff] %v1350_v17  ;;  %v2475_v23 = vpop.f32.mrf.mxu3 }
  0xb8   : > { %v1357_v26 = vpop.f32.mrf.mxu2  ;;  %v1014_v27 = vpop.f32.mrf.mxu0 }
  0xb9   : > { %v1183_v29 = vpop.f32.mrf.mxu1 }
  0xba   : > { %v1184_v30 = vadd.f32 %v1183_v29, %v1014_v27  ;;  %v2210_v29 = vld [vmem:[%s2337_s3 + $0x2a4] sm:$0xf] }
  0xbb   : > { %1053 = vmatmul.bf16.gmra.mxu0 %v1747_v24  ;;  %1302 = vmatmul.bf16.gmra.mxu3 %v1943_v25  ;;  %v1803_v24 = vor.u32 %v2167_v19, %v1802_v18  ;;  %v2169_v18 = vld [vmem:[%s2337_s3 + $0x158] sm:$0xf0]  ;;  %v2216_v19 = vld [vmem:[%s2337_s3 + $0x2d4] sm:$0xf] }
  0xbc   : > { %v1353_v31 = vadd.f32 %v1352_v2, %v1184_v30  ;;  %1222 = vmatmul.bf16.gmra.mxu1 %v1751_v28  ;;  %v2160_v2 = vld [vmem:[%s2337_s3 + $0x110] sm:$0xf0]  ;;  %v2163_v28 = vld [vmem:[%s2337_s3 + $0x128] sm:$0xf0]  ;;  %v1976_v30 = vld [vmem:[%s2337_s3 + $0x2ac] sm:$0xf0] }
  0xbd   : > { %v1771_v9 = vor.u32 %v2160_v2, %v1770_v0 }
  0xbe   : > { %1509 = vst [vmem:[%s2460_s29 + $0x10] sm:$0xff] %v1353_v31  ;;  %v2478_v32 = vpop.f32.mrf.mxu3  ;;  %v2162_v31 = vld [vmem:[%s2337_s3 + $0x124] sm:$0xf] }
  0xc0   : > { %v1359_v35 = vpop.f32.mrf.mxu2  ;;  %v1016_v36 = vpop.f32.mrf.mxu0 }
  0xc1   : > { %v1185_v37 = vpop.f32.mrf.mxu1 }
  0xc2   : > { %v1186_v39 = vadd.f32 %v1185_v37, %v1016_v36  ;;  %v1979_v36 = vor.u32 %v2210_v29, %v1976_v30 }
  0xc4   : > { %v1355_v41 = vadd.f32 %v1354_v11, %v1186_v39  ;;  %v1787_v39 = vor.u32 %v2162_v31, %v1784_v33 }
  0xc5   : > { %2103 = vmatmul.msk.bf16.gmra.mxu2 %vm903_vm0, %v1779_v38 }
  0xc6   : > { %1510 = vst [vmem:[%s2460_s29 + $0x18] sm:$0xff] %v1355_v41  ;;  %v2490_v47 = vpop.f32.mrf.mxu3 }
  0xc8   : > { %v1362_v50 = vpop.f32.mrf.mxu2  ;;  %v1019_v51 = vpop.f32.mrf.mxu0 }
  0xc9   : > { %v1188_v53 = vpop.f32.mrf.mxu1 }
  0xca   : > { %v1189_v54 = vadd.f32 %v1188_v53, %v1019_v51 }
  0xcb   : > { %1058 = vmatmul.bf16.gmra.mxu0 %v1759_v48  ;;  %1307 = vmatmul.bf16.gmra.mxu3 %v1955_v49 }
  0xcc   : > { %v1358_v55 = vadd.f32 %v1357_v26, %v1189_v54  ;;  %1227 = vmatmul.bf16.gmra.mxu1 %v1763_v52  ;;  %v1782_v26 = vld [vmem:[%s2337_s3 + $0x120] sm:$0xf]  ;;  %v1794_v52 = vld [vmem:[%s2337_s3 + $0x138] sm:$0xf]  ;;  %v2166_v54 = vld [vmem:[%s2337_s3 + $0x140] sm:$0xf0] }
  0xce   : > { %1511 = vst [vmem:[%s2460_s29 + $0x20] sm:$0xff] %v1358_v55  ;;  %v2493_v56 = vpop.f32.mrf.mxu3  ;;  %v2213_v55 = vld [vmem:[%s2337_s3 + $0x2bc] sm:$0xf] }
  0xd0   : > { %v1364_v59 = vpop.f32.mrf.mxu2  ;;  %v1021_v60 = vpop.f32.mrf.mxu0 }
  0xd1   : > { %v1190_v61 = vpop.f32.mrf.mxu1 }
  0xd2   : > { %v1191_v63 = vadd.f32 %v1190_v61, %v1021_v60  ;;  %v1795_v61 = vor.u32 %v2166_v54, %v1794_v52 }
  0xd4   : > { %v1360_v1 = vadd.f32 %v1359_v35, %v1191_v63  ;;  %v1783_v35 = vor.u32 %v2163_v28, %v1782_v26 }
  0xd5   : > { %2104 = vmatmul.msk.bf16.gmra.mxu2 %vm903_vm0, %v1791_v62  ;;  %v1991_v62 = vor.u32 %v2213_v55, %v1988_v57 }
  0xd6   : > { %1512 = vst [vmem:[%s2460_s29 + $0x28] sm:$0xff] %v1360_v1  ;;  %v2505_v7 = vpop.f32.mrf.mxu3 }
  0xd8   : > { %v1367_v11 = vpop.f32.mrf.mxu2  ;;  %v1024_v12 = vpop.f32.mrf.mxu0 }
  0xd9   : > { %v1193_v14 = vpop.f32.mrf.mxu1 }
  0xda   : > { %v1194_v15 = vadd.f32 %v1193_v14, %v1024_v12 }
  0xdb   : > { %1063 = vmatmul.bf16.gmra.mxu0 %v1771_v9  ;;  %1312 = vmatmul.bf16.gmra.mxu3 %v1967_v10  ;;  %v2173_v9 = vld [vmem:[%s2337_s3 + $0x178] sm:$0xf0] }
  0xdc   : > { %v1363_v16 = vadd.f32 %v1362_v50, %v1194_v15  ;;  %1232 = vmatmul.bf16.gmra.mxu1 %v1775_v13  ;;  %v1815_v50 = vor.u32 %v2170_v45, %v1814_v44  ;;  %v1827_v13 = vor.u32 %v2173_v9, %v1826_v6  ;;  %v1806_v15 = vld [vmem:[%s2337_s3 + $0x150] sm:$0xf]  ;;  %v1818_v44 = vld [vmem:[%s2337_s3 + $0x168] sm:$0xf] }
  0xde   : > { %1513 = vst [vmem:[%s2460_s29 + $0x30] sm:$0xff] %v1363_v16  ;;  %v2508_v17 = vpop.f32.mrf.mxu3 }
  0xe0   : > { %v1369_v20 = vpop.f32.mrf.mxu2  ;;  %v1026_v21 = vpop.f32.mrf.mxu0 }
  0xe1   : > { %v1195_v22 = vpop.f32.mrf.mxu1 }
  0xe2   : > { %v1196_v25 = vadd.f32 %v1195_v22, %v1026_v21  ;;  %v2168_v21 = vld [vmem:[%s2337_s3 + $0x154] sm:$0xf]  ;;  %v1808_v22 = vld [vmem:[%s2337_s3 + $0x15c] sm:$0xf0] }
  0xe3   : > { %v1811_v29 = vor.u32 %v2168_v21, %v1808_v22 }
  0xe4   : > { %v1365_v27 = vadd.f32 %v1364_v59, %v1196_v25  ;;  %v1796_v59 = vld [vmem:[%s2337_s3 + $0x144] sm:$0xf0]  ;;  %v1807_v25 = vor.u32 %v2169_v18, %v1806_v15  ;;  %v2174_v15 = vld [vmem:[%s2337_s3 + $0x184] sm:$0xf] }
  0xe5   : > { %2105 = vmatmul.msk.bf16.gmra.mxu2 %vm903_vm0, %v1803_v24  ;;  %v1799_v1 = vor.u32 %v2165_v58, %v1796_v59 }
  0xe6   : > { %1514 = vst [vmem:[%s2460_s29 + $0x38] sm:$0xff] %v1365_v27  ;;  %v2520_v34 = vpop.f32.mrf.mxu3 }
  0xe8   : > { %v1372_v37 = vpop.f32.mrf.mxu2  ;;  %v1029_v38 = vpop.f32.mrf.mxu0 }
  0xe9   : > { %v1198_v40 = vpop.f32.mrf.mxu1 }
  0xea   : > { %v1199_v41 = vadd.f32 %v1198_v40, %v1029_v38 }
  0xeb   : > { %1068 = vmatmul.bf16.gmra.mxu0 %v1783_v35  ;;  %1317 = vmatmul.bf16.gmra.mxu3 %v1979_v36  ;;  %v1838_v36 = vld [vmem:[%s2337_s3 + $0x188] sm:$0xf] }
  0xec   : > { %v1368_v42 = vadd.f32 %v1367_v11, %v1199_v41  ;;  %1237 = vmatmul.bf16.gmra.mxu1 %v1787_v39 }
  0xee   : > { %1515 = vst [vmem:[%s2460_s29 + $0x40] sm:$0xff] %v1368_v42  ;;  %v2523_v43 = vpop.f32.mrf.mxu3 }
  0xf0   : > { %v1374_v46 = vpop.f32.mrf.mxu2  ;;  %v1031_v48 = vpop.f32.mrf.mxu0 }
  0xf1   : > { %v1200_v49 = vpop.f32.mrf.mxu1 }
  0xf2   : > { %v1201_v51 = vadd.f32 %v1200_v49, %v1031_v48  ;;  %v2219_v48 = vld [vmem:[%s2337_s3 + $0x2ec] sm:$0xf]  ;;  %v2012_v49 = vld [vmem:[%s2337_s3 + $0x2f4] sm:$0xf0] }
  0xf3   : > { %v2015_v54 = vor.u32 %v2219_v48, %v2012_v49  ;;  %v1844_v48 = vld [vmem:[%s2337_s3 + $0x1a4] sm:$0xf0] }
  0xf4   : > { %v1370_v53 = vadd.f32 %v1369_v20, %v1201_v51  ;;  %v2000_v20 = vld [vmem:[%s2337_s3 + $0x2dc] sm:$0xf0]  ;;  %v1820_v51 = vld [vmem:[%s2337_s3 + $0x174] sm:$0xf0] }
  0xf5   : > { %2106 = vmatmul.msk.bf16.gmra.mxu2 %vm903_vm0, %v1815_v50  ;;  %v2003_v26 = vor.u32 %v2216_v19, %v2000_v20  ;;  %v2171_v50 = vld [vmem:[%s2337_s3 + $0x16c] sm:$0xf] }
  0xf6   : > { %1516 = vst [vmem:[%s2460_s29 + $0x48] sm:$0xff] %v1370_v53  ;;  %v2535_v60 = vpop.f32.mrf.mxu3  ;;  %v1823_v58 = vor.u32 %v2171_v50, %v1820_v51 }
  0xf8   : > { %v1377_v63 = vpop.f32.mrf.mxu2  ;;  %v1034_v0 = vpop.f32.mrf.mxu0 }
  0xf9   : > { %v1203_v2 = vpop.f32.mrf.mxu1 }
  0xfa   : > { %v1204_v3 = vadd.f32 %v1203_v2, %v1034_v0  ;;  %v1850_v0 = vld [vmem:[%s2337_s3 + $0x1a0] sm:$0xf] }
  0xfb   : > { %1073 = vmatmul.bf16.gmra.mxu0 %v1795_v61  ;;  %1322 = vmatmul.bf16.gmra.mxu3 %v1991_v62 }
  0xfc   : > { %v1373_v4 = vadd.f32 %v1372_v37, %v1204_v3  ;;  %1242 = vmatmul.bf16.gmra.mxu1 %v1799_v1  ;;  %v2176_v37 = vld [vmem:[%s2337_s3 + $0x190] sm:$0xf0]  ;;  %v2179_v1 = vld [vmem:[%s2337_s3 + $0x1a8] sm:$0xf0] }
  0xfd   : > { %v1839_v41 = vor.u32 %v2176_v37, %v1838_v36  ;;  %v1851_v6 = vor.u32 %v2179_v1, %v1850_v0  ;;  %v2185_v0 = vld [vmem:[%s2337_s3 + $0x1d8] sm:$0xf0] }
  0xfe   : > { %1517 = vst [vmem:[%s2460_s29 + $0x50] sm:$0xff] %v1373_v4  ;;  %v2538_v5 = vpop.f32.mrf.mxu3 }
 0x100   : > { %v1379_v10 = vpop.f32.mrf.mxu2  ;;  %v1036_v11 = vpop.f32.mrf.mxu0 }
 0x101   : > { %v1205_v12 = vpop.f32.mrf.mxu1 }
 0x102   : > { %v1206_v14 = vadd.f32 %v1205_v12, %v1036_v11  ;;  %v2175_v12 = vld [vmem:[%s2337_s3 + $0x188] sm:$0xf0] }
 0x104   : > { %v1375_v16 = vadd.f32 %v1374_v46, %v1206_v14  ;;  %v2172_v46 = vld [vmem:[%s2337_s3 + $0x170] sm:$0xf0]  ;;  %v2206_v14 = vld [vmem:[%s2337_s3 + $0x280] sm:$0xf0] }
 0x105   : > { %2107 = vmatmul.msk.bf16.gmra.mxu2 %vm903_vm0, %v1827_v13  ;;  %v1819_v53 = vor.u32 %v2172_v46, %v1818_v44  ;;  %v1958_v13 = vld [vmem:[%s2337_s3 + $0x278] sm:$0xf]  ;;  %v1970_v44 = vld [vmem:[%s2337_s3 + $0x290] sm:$0xf]  ;;  %v2177_v46 = vld [vmem:[%s2337_s3 + $0x19c] sm:$0xf] }
 0x106   : > { %1518 = vst [vmem:[%s2460_s29 + $0x58] sm:$0xff] %v1375_v16  ;;  %v2550_v24 = vpop.f32.mrf.mxu3  ;;  %v1832_v16 = vld [vmem:[%s2337_s3 + $0x18c] sm:$0xf0]  ;;  %v1959_v20 = vor.u32 %v2206_v14, %v1958_v13  ;;  %v2212_v13 = vld [vmem:[%s2337_s3 + $0x2b0] sm:$0xf0] }
 0x107   : > { %v2180_v14 = vld [vmem:[%s2337_s3 + $0x1b4] sm:$0xf] }
 0x108   : > { %v1382_v27 = vpop.f32.mrf.mxu2  ;;  %v1039_v28 = vpop.f32.mrf.mxu0 }
 0x109   : > { %v1208_v30 = vpop.f32.mrf.mxu1 }
 0x10a   : > { %v1209_v31 = vadd.f32 %v1208_v30, %v1039_v28  ;;  %v1862_v30 = vld [vmem:[%s2337_s3 + $0x1b8] sm:$0xf] }
 0x10b   : > { %1078 = vmatmul.bf16.gmra.mxu0 %v1807_v25  ;;  %1327 = vmatmul.bf16.gmra.mxu3 %v2003_v26  ;;  %v1835_v25 = vor.u32 %v2174_v15, %v1832_v16  ;;  %v1856_v15 = vld [vmem:[%s2337_s3 + $0x1bc] sm:$0xf0] }
 0x10c   : > { %v1378_v33 = vadd.f32 %v1377_v63, %v1209_v31  ;;  %1247 = vmatmul.bf16.gmra.mxu1 %v1811_v29  ;;  %v2182_v31 = vld [vmem:[%s2337_s3 + $0x1c0] sm:$0xf0] }
 0x10e   : > { %1519 = vst [vmem:[%s2460_s29 + $0x60] sm:$0xff] %v1378_v33  ;;  %v2553_v35 = vpop.f32.mrf.mxu3 }
 0x110   : > { %v1384_v38 = vpop.f32.mrf.mxu2  ;;  %v1041_v39 = vpop.f32.mrf.mxu0 }
 0x111   : > { %v1210_v40 = vpop.f32.mrf.mxu1 }
 0x112   : > { %v1211_v42 = vadd.f32 %v1210_v40, %v1041_v39  ;;  %v1842_v40 = vld [vmem:[%s2337_s3 + $0x198] sm:$0xf] }
 0x114   : > { %v1380_v45 = vadd.f32 %v1379_v10, %v1211_v42  ;;  %v1830_v10 = vld [vmem:[%s2337_s3 + $0x180] sm:$0xf]  ;;  %v2178_v42 = vld [vmem:[%s2337_s3 + $0x1a0] sm:$0xf0] }
 0x115   : > { %2108 = vmatmul.msk.bf16.gmra.mxu2 %vm903_vm0, %v1839_v41  ;;  %v1831_v19 = vor.u32 %v2175_v12, %v1830_v10  ;;  %v1843_v50 = vor.u32 %v2178_v42, %v1842_v40  ;;  %v1982_v12 = vld [vmem:[%s2337_s3 + $0x2a8] sm:$0xf] }
 0x116   : > { %1520 = vst [vmem:[%s2460_s29 + $0x68] sm:$0xff] %v1380_v45  ;;  %v2565_v52 = vpop.f32.mrf.mxu3  ;;  %v2209_v45 = vld [vmem:[%s2337_s3 + $0x298] sm:$0xf0] }
 0x117   : > { %v1971_v51 = vor.u32 %v2209_v45, %v1970_v44  ;;  %v2184_v44 = vld [vmem:[%s2337_s3 + $0x1d0] sm:$0xf0]  ;;  %v1994_v45 = vld [vmem:[%s2337_s3 + $0x2c0] sm:$0xf] }
 0x118   : > { %v1387_v55 = vpop.f32.mrf.mxu2  ;;  %v1044_v57 = vpop.f32.mrf.mxu0 }
 0x119   : > { %v1213_v59 = vpop.f32.mrf.mxu1 }
 0x11a   : > { %v1214_v61 = vadd.f32 %v1213_v59, %v1044_v57 }
 0x11b   : > { %1083 = vmatmul.bf16.gmra.mxu0 %v1819_v53  ;;  %1332 = vmatmul.bf16.gmra.mxu3 %v2015_v54 }
 0x11c   : > { %v1383_v62 = vadd.f32 %v1382_v27, %v1214_v61  ;;  %1252 = vmatmul.bf16.gmra.mxu1 %v1823_v58 }
 0x11e   : > { %1521 = vst [vmem:[%s2460_s29 + $0x70] sm:$0xff] %v1383_v62  ;;  %v2568_v63 = vpop.f32.mrf.mxu3  ;;  %v1874_v62 = vld [vmem:[%s2337_s3 + $0x1d0] sm:$0xf] }
 0x120   : > { %v1389_v2 = vpop.f32.mrf.mxu2  ;;  %v1046_v3 = vpop.f32.mrf.mxu0 }
 0x121   : > { %v1215_v4 = vpop.f32.mrf.mxu1 }
 0x122   : > { %v1216_v9 = vadd.f32 %v1215_v4, %v1046_v3  ;;  %v1875_v4 = vor.u32 %v2185_v0, %v1874_v62 }
 0x124   : > { %v1385_v11 = vadd.f32 %v1384_v38, %v1216_v9  ;;  %v1863_v38 = vor.u32 %v2182_v31, %v1862_v30  ;;  %v1854_v9 = vld [vmem:[%s2337_s3 + $0x1b0] sm:$0xf]  ;;  %v1886_v31 = vld [vmem:[%s2337_s3 + $0x1e8] sm:$0xf] }
 0x125   : > { %2109 = vmatmul.msk.bf16.gmra.mxu2 %vm903_vm0, %v1851_v6 }
 0x126   : > { %1522 = vst [vmem:[%s2460_s29 + $0x78] sm:$0xff] %v1385_v11  ;;  %v2580_v18 = vpop.f32.mrf.mxu3  ;;  %v2181_v11 = vld [vmem:[%s2337_s3 + $0x1b8] sm:$0xf0] }
 0x128   : > { %v1392_v21 = vpop.f32.mrf.mxu2  ;;  %v1049_v22 = vpop.f32.mrf.mxu0 }
 0x129   : > { %v1218_v26 = vpop.f32.mrf.mxu1 }
 0x12a   : > { %v1219_v27 = vadd.f32 %v1218_v26, %v1049_v22 }
 0x12b   : > { %1088 = vmatmul.bf16.gmra.mxu0 %v1831_v19  ;;  %2118 = vmatmul.msk.bf16.vlgmr.msra.gmra.mxu3 %vm903_vm0, %v1959_v20  ;;  %v1855_v19 = vor.u32 %v2181_v11, %v1854_v9  ;;  %v1983_v20 = vor.u32 %v2212_v13, %v1982_v12  ;;  %v1878_v12 = vld [vmem:[%s2337_s3 + $0x1e0] sm:$0xf] }
 0x12c   : > { %v1388_v28 = vadd.f32 %v1387_v55, %v1219_v27  ;;  %1257 = vmatmul.bf16.gmra.mxu1 %v1835_v25  ;;  %v1847_v55 = vor.u32 %v2177_v46, %v1844_v48  ;;  %v1859_v25 = vor.u32 %v2180_v14, %v1856_v15  ;;  %v2215_v46 = vld [vmem:[%s2337_s3 + $0x2c8] sm:$0xf0]  ;;  %v2006_v15 = vld [vmem:[%s2337_s3 + $0x2d8] sm:$0xf] }
 0x12d   : > { %v2183_v48 = vld [vmem:[%s2337_s3 + $0x1cc] sm:$0xf] }
 0x12e   : > { %1523 = vst [vmem:[%s2460_s29 + $0x80] sm:$0xff] %v1388_v28  ;;  %v2584_v29 = vpop.f32.mrf.mxu3  ;;  %v2187_v14 = vld [vmem:[%s2337_s3 + $0x1e8] sm:$0xf0] }
 0x130   : > { %v1394_v33 = vpop.f32.mrf.mxu2  ;;  %v1051_v36 = vpop.f32.mrf.mxu0 }
 0x131   : > { %v1220_v37 = vpop.f32.mrf.mxu1 }
 0x132   : > { %v1221_v39 = vadd.f32 %v1220_v37, %v1051_v36 }
 0x134   : > { %v1390_v41 = vadd.f32 %v1389_v2, %v1221_v39 }
 0x135   : > { %2110 = vmatmul.msk.bf16.gmra.mxu2 %vm903_vm0, %v1863_v38 }
 0x136   : > { %1524 = vst [vmem:[%s2460_s29 + $0x88] sm:$0xff] %v1390_v41  ;;  %v2596_v49 = vpop.f32.mrf.mxu3  ;;  %v1866_v41 = vld [vmem:[%s2337_s3 + $0x1c8] sm:$0xf] }
 0x138   : > { %v1397_v53 = vpop.f32.mrf.mxu2  ;;  %v1054_v54 = vpop.f32.mrf.mxu0 }
 0x139   : > { %v1223_v57 = vpop.f32.mrf.mxu1 }
 0x13a   : > { %v1224_v58 = vadd.f32 %v1223_v57, %v1054_v54  ;;  %v1995_v54 = vor.u32 %v2215_v46, %v1994_v45 }
 0x13b   : > { %1093 = vmatmul.bf16.gmra.mxu0 %v1843_v50  ;;  %2119 = vmatmul.msk.bf16.gmra.mxu3 %vm903_vm0, %v1971_v51  ;;  %v1868_v50 = vld [vmem:[%s2337_s3 + $0x1d4] sm:$0xf0] }
 0x13c   : > { %v1393_v59 = vadd.f32 %v1392_v21, %v1224_v58  ;;  %1262 = vmatmul.bf16.gmra.mxu1 %v1847_v55  ;;  %v1871_v58 = vor.u32 %v2183_v48, %v1868_v50  ;;  %v1890_v48 = vld [vmem:[%s2337_s3 + $0x1f8] sm:$0xf] }
 0x13e   : > { %1525 = vst [vmem:[%s2460_s29 + $0x90] sm:$0xff] %v1393_v59  ;;  %v2600_v61 = vpop.f32.mrf.mxu3 }
 0x140   : > { %v1399_v1 = vpop.f32.mrf.mxu2  ;;  %v1056_v2 = vpop.f32.mrf.mxu0 }
 0x141   : > { %v1225_v3 = vpop.f32.mrf.mxu1 }
 0x142   : > { %v1226_v6 = vadd.f32 %v1225_v3, %v1056_v2  ;;  %v1898_v2 = vld [vmem:[%s2337_s3 + $0x200] sm:$0xf]  ;;  %v2191_v3 = vld [vmem:[%s2337_s3 + $0x208] sm:$0xf0] }
 0x144   : > { %v1395_v10 = vadd.f32 %v1394_v33, %v1226_v6  ;;  %v2188_v33 = vld [vmem:[%s2337_s3 + $0x1f0] sm:$0xf0] }
 0x145   : > { %2111 = vmatmul.msk.bf16.gmra.mxu2 %vm903_vm0, %v1875_v4  ;;  %v1887_v39 = vor.u32 %v2188_v33, %v1886_v31 }
 0x146   : > { %1526 = vst [vmem:[%s2460_s29 + $0x98] sm:$0xff] %v1395_v10  ;;  %v2612_v16 = vpop.f32.mrf.mxu3  ;;  %v1899_v10 = vor.u32 %v2191_v3, %v1898_v2 }
 0x148   : > { %v1402_v21 = vpop.f32.mrf.mxu2  ;;  %v1059_v22 = vpop.f32.mrf.mxu0 }
 0x149   : > { %v1228_v26 = vpop.f32.mrf.mxu1 }
 0x14a   : > { %v1229_v27 = vadd.f32 %v1228_v26, %v1059_v22 }
 0x14b   : > { %1098 = vmatmul.bf16.gmra.mxu0 %v1855_v19  ;;  %2120 = vmatmul.msk.bf16.gmra.mxu3 %vm903_vm0, %v1983_v20  ;;  %v2218_v19 = vld [vmem:[%s2337_s3 + $0x2e0] sm:$0xf0] }
 0x14c   : > { %v1398_v28 = vadd.f32 %v1397_v53, %v1229_v27  ;;  %1267 = vmatmul.bf16.gmra.mxu1 %v1859_v25  ;;  %v1867_v53 = vor.u32 %v2184_v44, %v1866_v41  ;;  %v2186_v20 = vld [vmem:[%s2337_s3 + $0x1e4] sm:$0xf]  ;;  %v1879_v25 = vor.u32 %v2187_v14, %v1878_v12  ;;  %v2007_v26 = vor.u32 %v2218_v19, %v2006_v15  ;;  %v1922_v12 = vld [vmem:[%s2337_s3 + $0x230] sm:$0xf] }
 0x14e   : > { %1527 = vst [vmem:[%s2460_s29 + $0xa0] sm:$0xff] %v1398_v28  ;;  %v2616_v30 = vpop.f32.mrf.mxu3 }
 0x150   : > { %v1404_v36 = vpop.f32.mrf.mxu2  ;;  %v1061_v37 = vpop.f32.mrf.mxu0 }
 0x151   : > { %v1230_v38 = vpop.f32.mrf.mxu1 }
 0x152   : > { %v1231_v40 = vadd.f32 %v1230_v38, %v1061_v37 }
 0x154   : > { %v1400_v42 = vadd.f32 %v1399_v1, %v1231_v40  ;;  %v2194_v40 = vld [vmem:[%s2337_s3 + $0x220] sm:$0xf0] }
 0x155   : > { %2112 = vmatmul.msk.bf16.gmra.mxu2 %vm903_vm0, %v1887_v39  ;;  %v1910_v39 = vld [vmem:[%s2337_s3 + $0x218] sm:$0xf] }
 0x156   : > { %1528 = vst [vmem:[%s2460_s29 + $0xa8] sm:$0xff] %v1400_v42  ;;  %v2628_v51 = vpop.f32.mrf.mxu3  ;;  %v1911_v45 = vor.u32 %v2194_v40, %v1910_v39 }
 0x158   : > { %v1407_v55 = vpop.f32.mrf.mxu2  ;;  %v1064_v57 = vpop.f32.mrf.mxu0 }
 0x159   : > { %v1233_v59 = vpop.f32.mrf.mxu1 }
 0x15a   : > { %v1234_v62 = vadd.f32 %v1233_v59, %v1064_v57  ;;  %v2221_v57 = vld [vmem:[%s2337_s3 + $0x2f8] sm:$0xf0] }
 0x15b   : > { %1103 = vmatmul.bf16.gmra.mxu0 %v1867_v53  ;;  %2121 = vmatmul.msk.bf16.gmra.mxu3 %vm903_vm0, %v1995_v54  ;;  %v2190_v53 = vld [vmem:[%s2337_s3 + $0x200] sm:$0xf0]  ;;  %v2018_v54 = vld [vmem:[%s2337_s3 + $0x2f0] sm:$0xf] }
 0x15c   : > { %v1403_v0 = vadd.f32 %v1402_v21, %v1234_v62  ;;  %1272 = vmatmul.bf16.gmra.mxu1 %v1871_v58  ;;  %v1880_v21 = vld [vmem:[%s2337_s3 + $0x1ec] sm:$0xf0]  ;;  %v1892_v58 = vld [vmem:[%s2337_s3 + $0x204] sm:$0xf0]  ;;  %v1891_v62 = vor.u32 %v2190_v53, %v1890_v48  ;;  %v2200_v48 = vld [vmem:[%s2337_s3 + $0x250] sm:$0xf0] }
 0x15d   : > { %v1883_v31 = vor.u32 %v2186_v20, %v1880_v21 }
 0x15e   : > { %1529 = vst [vmem:[%s2460_s29 + $0xb0] sm:$0xff] %v1403_v0  ;;  %v2632_v1 = vpop.f32.mrf.mxu3  ;;  %v2019_v0 = vor.u32 %v2221_v57, %v2018_v54 }
 0x160   : > { %v1409_v4 = vpop.f32.mrf.mxu2  ;;  %v1066_v6 = vpop.f32.mrf.mxu0 }
 0x161   : > { %v1235_v9 = vpop.f32.mrf.mxu1 }
 0x162   : > { %v1236_v11 = vadd.f32 %v1235_v9, %v1066_v6 }
 0x164   : > { %v1405_v13 = vadd.f32 %v1404_v36, %v1236_v11 }
 0x165   : > { %2113 = vmatmul.msk.bf16.gmra.mxu2 %vm903_vm0, %v1899_v10 }
 0x166   : > { %1530 = vst [vmem:[%s2460_s29 + $0xb8] sm:$0xff] %v1405_v13  ;;  %v2644_v22 = vpop.f32.mrf.mxu3  ;;  %v2197_v13 = vld [vmem:[%s2337_s3 + $0x238] sm:$0xf0] }
 0x167   : > { %v1923_v20 = vor.u32 %v2197_v13, %v1922_v12 }
 0x168   : > { %v1412_v27 = vpop.f32.mrf.mxu2  ;;  %v1069_v28 = vpop.f32.mrf.mxu0 }
 0x169   : > { %v1238_v33 = vpop.f32.mrf.mxu1 }
 0x16a   : > { %v1239_v36 = vadd.f32 %v1238_v33, %v1069_v28  ;;  %v2193_v28 = vld [vmem:[%s2337_s3 + $0x218] sm:$0xf0] }
 0x16b   : > { %1108 = vmatmul.bf16.gmra.mxu0 %v1879_v25  ;;  %2122 = vmatmul.msk.bf16.gmra.mxu3 %vm903_vm0, %v2007_v26  ;;  %v1902_v26 = vld [vmem:[%s2337_s3 + $0x210] sm:$0xf] }
 0x16c   : > { %v1408_v37 = vadd.f32 %v1407_v55, %v1239_v36  ;;  %1277 = vmatmul.bf16.gmra.mxu1 %v1883_v31  ;;  %v2189_v55 = vld [vmem:[%s2337_s3 + $0x1fc] sm:$0xf]  ;;  %v1904_v31 = vld [vmem:[%s2337_s3 + $0x21c] sm:$0xf0]  ;;  %v1903_v36 = vor.u32 %v2193_v28, %v1902_v26 }
 0x16d   : > { %v1895_v6 = vor.u32 %v2189_v55, %v1892_v58 }
 0x16e   : > { %1531 = vst [vmem:[%s2460_s29 + $0xc0] sm:$0xff] %v1408_v37  ;;  %v2648_v38 = vpop.f32.mrf.mxu3 }
 0x170   : > { %v1414_v41 = vpop.f32.mrf.mxu2  ;;  %v1071_v42 = vpop.f32.mrf.mxu0 }
 0x171   : > { %v1240_v44 = vpop.f32.mrf.mxu1 }
 0x172   : > { %v1241_v46 = vadd.f32 %v1240_v44, %v1071_v42 }
 0x174   : > { %v1410_v50 = vadd.f32 %v1409_v4, %v1241_v46  ;;  %v1934_v46 = vld [vmem:[%s2337_s3 + $0x248] sm:$0xf] }
 0x175   : > { %2114 = vmatmul.msk.bf16.gmra.mxu2 %vm903_vm0, %v1911_v45  ;;  %v1935_v57 = vor.u32 %v2200_v48, %v1934_v46  ;;  %v1309_v46 = vadd.f32 %v2616_v30, %v2493_v56 }
 0x176   : > { %1532 = vst [vmem:[%s2460_s29 + $0xc8] sm:$0xff] %v1410_v50  ;;  %v2660_v59 = vpop.f32.mrf.mxu3 }
 0x178   : > { %v1417_v2 = vpop.f32.mrf.mxu2  ;;  %v1074_v3 = vpop.f32.mrf.mxu0 }
 0x179   : > { %v1243_v9 = vpop.f32.mrf.mxu1 }
 0x17a   : > { %v1244_v4 = vadd.f32 %v1243_v9, %v1074_v3  ;;  %v1916_v3 = vld [vmem:[%s2337_s3 + $0x234] sm:$0xf0] }
 0x17b   : > { %1113 = vmatmul.bf16.gmra.mxu0 %v1891_v62  ;;  %2123 = vmatmul.msk.bf16.gmra.mxu3 %vm903_vm0, %v2019_v0  ;;  %v1914_v62 = vld [vmem:[%s2337_s3 + $0x228] sm:$0xf]  ;;  %v2196_v0 = vld [vmem:[%s2337_s3 + $0x230] sm:$0xf0] }
 0x17c   : > { %v1413_v10 = vadd.f32 %v1412_v27, %v1244_v4  ;;  %1282 = vmatmul.bf16.gmra.mxu1 %v1895_v6  ;;  %v2192_v27 = vld [vmem:[%s2337_s3 + $0x214] sm:$0xf]  ;;  %v1915_v9 = vor.u32 %v2196_v0, %v1914_v62  ;;  %v1311_v62 = vadd.f32 %v2628_v51, %v2505_v7 }
 0x17d   : > { %v1907_v40 = vor.u32 %v2192_v27, %v1904_v31 }
 0x17e   : > { %1533 = vst [vmem:[%s2460_s29 + $0xd0] sm:$0xff] %v1413_v10  ;;  %v2664_v11 = vpop.f32.mrf.mxu3 }
 0x180   : > { %v1419_v14 = vpop.f32.mrf.mxu2  ;;  %v1076_v15 = vpop.f32.mrf.mxu0 }
 0x181   : > { %v1245_v19 = vpop.f32.mrf.mxu1 }
 0x182   : > { %v1246_v21 = vadd.f32 %v1245_v19, %v1076_v15 }
 0x184   : > { %v1415_v25 = vadd.f32 %v1414_v41, %v1246_v21  ;;  %v2203_v21 = vld [vmem:[%s2337_s3 + $0x268] sm:$0xf0] }
 0x185   : > { %2115 = vmatmul.msk.bf16.gmra.mxu2 %vm903_vm0, %v1923_v20  ;;  %v1946_v20 = vld [vmem:[%s2337_s3 + $0x260] sm:$0xf] }
 0x186   : > { %1534 = vst [vmem:[%s2460_s29 + $0xd8] sm:$0xff] %v1415_v25  ;;  %v2674_v33 = vpop.f32.mrf.mxu3  ;;  %v1947_v27 = vor.u32 %v2203_v21, %v1946_v20  ;;  %v1316_v21 = vadd.f32 %v2644_v22, %v2520_v34 }
 0x188   : > { %v1422_v37 = vpop.f32.mrf.mxu2  ;;  %v1079_v39 = vpop.f32.mrf.mxu0 }
 0x189   : > { %v1248_v42 = vpop.f32.mrf.mxu1 }
 0x18a   : > { %v1249_v41 = vadd.f32 %v1248_v42, %v1079_v39 }
 0x18b   : > { %1118 = vmatmul.bf16.gmra.mxu0 %v1903_v36 }
 0x18c   : > { %v1418_v44 = vadd.f32 %v1417_v2, %v1249_v41  ;;  %1287 = vmatmul.bf16.gmra.mxu1 %v1907_v40  ;;  %v2195_v2 = vld [vmem:[%s2337_s3 + $0x22c] sm:$0xf] }
 0x18d   : > { %v1919_v12 = vor.u32 %v2195_v2, %v1916_v3 }
 0x18e   : > { %1535 = vst [vmem:[%s2460_s29 + $0xe0] sm:$0xff] %v1418_v44  ;;  %v2677_v45 = vpop.f32.mrf.mxu3 }
 0x190   : > { %v1424_v50 = vpop.f32.mrf.mxu2  ;;  %v1081_v53 = vpop.f32.mrf.mxu0 }
 0x191   : > { %v1250_v54 = vpop.f32.mrf.mxu1 }
 0x192   : > { %v1251_v55 = vadd.f32 %v1250_v54, %v1081_v53 }
 0x194   : > { %v1420_v58 = vadd.f32 %v1419_v14, %v1251_v55 }
 0x195   : > { %2116 = vmatmul.msk.bf16.gmra.mxu2 %vm903_vm0, %v1935_v57 }
 0x196   : > { %1536 = vst [vmem:[%s2460_s29 + $0xe8] sm:$0xff] %v1420_v58  ;;  %v2687_v6 = vpop.f32.mrf.mxu3 }
 0x198   : > { %v1427_v4 = vpop.f32.mrf.mxu2  ;;  %v1084_v10 = vpop.f32.mrf.mxu0 }
 0x199   : > { %v1253_v13 = vpop.f32.mrf.mxu1 }
 0x19a   : > { %v1254_v15 = vadd.f32 %v1253_v13, %v1084_v10  ;;  %v1314_v10 = vadd.f32 %v2632_v1, %v2508_v17 }
 0x19b   : > { %1123 = vmatmul.bf16.gmra.mxu0 %v1915_v9 }
 0x19c   : > { %v1423_v14 = vadd.f32 %v1422_v37, %v1254_v15  ;;  %1292 = vmatmul.bf16.gmra.mxu1 %v1919_v12 }
 0x19e   : > { %1537 = vst [vmem:[%s2460_s29 + $0xf0] sm:$0xff] %v1423_v14  ;;  %v2690_v19 = vpop.f32.mrf.mxu3 }
 0x1a0   : > { %v1429_v25 = vpop.f32.mrf.mxu2  ;;  %v1086_v26 = vpop.f32.mrf.mxu0 }
 0x1a1   : > { %v1255_v28 = vpop.f32.mrf.mxu1 }
 0x1a2   : > { %v1256_v31 = vadd.f32 %v1255_v28, %v1086_v26 }
 0x1a4   : > { %v1425_v36 = vadd.f32 %v1424_v50, %v1256_v31 }
 0x1a5   : > { %2117 = vmatmul.msk.bf16.gmra.mxu2 %vm903_vm0, %v1947_v27 }
 0x1a6   : > { %1538 = vst [vmem:[%s2460_s29 + $0xf8] sm:$0xff] %v1425_v36  ;;  %v2696_v39 = vpop.f32.mrf.mxu3  ;;  %v1319_v36 = vadd.f32 %v2648_v38, %v2523_v43 }
 0x1a8   : > { %v1432_v37 = vpop.f32.mrf.mxu2  ;;  %v1089_v40 = vpop.f32.mrf.mxu0 }
 0x1a9   : > { %v1258_v42 = vpop.f32.mrf.mxu1 }
 0x1aa   : > { %v1259_v41 = vadd.f32 %v1258_v42, %v1089_v40 }
 0x1ac   : > { %v1428_v44 = vadd.f32 %v1427_v4, %v1259_v41 }
 0x1ae   : > { %1539 = vst [vmem:[%s2460_s29 + $0x100] sm:$0xff] %v1428_v44  ;;  %v1477_v48 = vpop.f32.mrf.mxu3 }
 0x1af   : > { %v1478_v53 = vadd.f32 %v1477_v48, %v1309_v46  ;;  %v1321_v46 = vadd.f32 %v2660_v59, %v2535_v60 }
 0x1b0   : > { %v1434_v54 = vpop.f32.mrf.mxu2  ;;  %v1091_v50 = vpop.f32.mrf.mxu0 }
 0x1b1   : > { %1559 = vst [vmem:[%s2460_s29 + $0x1a0] sm:$0xff] %v1478_v53  ;;  %v1260_v57 = vpop.f32.mrf.mxu1 }
 0x1b2   : > { %v1261_v55 = vadd.f32 %v1260_v57, %v1091_v50 }
 0x1b4   : > { %v1430_v58 = vadd.f32 %v1429_v25, %v1261_v55  ;;  %v1324_v55 = vadd.f32 %v2664_v11, %v2538_v5 }
 0x1b6   : > { %1540 = vst [vmem:[%s2460_s29 + $0x108] sm:$0xff] %v1430_v58  ;;  %v1479_v0 = vpop.f32.mrf.mxu3 }
 0x1b7   : > { %v1480_v2 = vadd.f32 %v1479_v0, %v1311_v62 }
 0x1b8   : > { %v1437_v3 = vpop.f32.mrf.mxu2  ;;  %v1094_v56 = vpop.f32.mrf.mxu0 }
 0x1b9   : > { %1560 = vst [vmem:[%s2460_s29 + $0x1a8] sm:$0xff] %v1480_v2  ;;  %v1263_v30 = vpop.f32.mrf.mxu1 }
 0x1ba   : > { %v1264_v9 = vadd.f32 %v1263_v30, %v1094_v56  ;;  %v1326_v56 = vadd.f32 %v2674_v33, %v2550_v24 }
 0x1bc   : > { %v1433_v4 = vadd.f32 %v1432_v37, %v1264_v9 }
 0x1be   : > { %1541 = vst [vmem:[%s2460_s29 + $0x110] sm:$0xff] %v1433_v4  ;;  %v1482_v12 = vpop.f32.mrf.mxu3 }
 0x1bf   : > { %v1483_v13 = vadd.f32 %v1482_v12, %v1314_v10 }
 0x1c0   : > { %v1439_v15 = vpop.f32.mrf.mxu2  ;;  %v1096_v7 = vpop.f32.mrf.mxu0 }
 0x1c1   : > { %1561 = vst [vmem:[%s2460_s29 + $0x1b0] sm:$0xff] %v1483_v13  ;;  %v1265_v51 = vpop.f32.mrf.mxu1  ;;  %v1329_v13 = vadd.f32 %v2677_v45, %v2553_v35 }
 0x1c2   : > { %v1266_v14 = vadd.f32 %v1265_v51, %v1096_v7 }
 0x1c4   : > { %v1435_v20 = vadd.f32 %v1434_v54, %v1266_v14 }
 0x1c6   : > { %1542 = vst [vmem:[%s2460_s29 + $0x118] sm:$0xff] %v1435_v20  ;;  %v1484_v25 = vpop.f32.mrf.mxu3 }
 0x1c7   : > { %v1485_v26 = vadd.f32 %v1484_v25, %v1316_v21  ;;  %v1331_v21 = vadd.f32 %v2687_v6, %v2565_v52 }
 0x1c8   : > { %v1442_v28 = vpop.f32.mrf.mxu2  ;;  %v1099_v17 = vpop.f32.mrf.mxu0 }
 0x1c9   : > { %1562 = vst [vmem:[%s2460_s29 + $0x1b8] sm:$0xff] %v1485_v26  ;;  %v1268_v1 = vpop.f32.mrf.mxu1 }
 0x1ca   : > { %v1269_v27 = vadd.f32 %v1268_v1, %v1099_v17 }
 0x1cc   : > { %v1438_v31 = vadd.f32 %v1437_v3, %v1269_v27  ;;  %v1334_v27 = vadd.f32 %v2690_v19, %v2568_v63 }
 0x1ce   : > { %1543 = vst [vmem:[%s2460_s29 + $0x120] sm:$0xff] %v1438_v31  ;;  %v1487_v37 = vpop.f32.mrf.mxu3 }
 0x1cf   : > { %v1488_v40 = vadd.f32 %v1487_v37, %v1319_v36 }
 0x1d0   : > { %v1444_v42 = vpop.f32.mrf.mxu2  ;;  %v1101_v34 = vpop.f32.mrf.mxu0 }
 0x1d1   : > { %1563 = vst [vmem:[%s2460_s29 + $0x1c0] sm:$0xff] %v1488_v40  ;;  %v1270_v22 = vpop.f32.mrf.mxu1 }
 0x1d2   : > { %v1271_v41 = vadd.f32 %v1270_v22, %v1101_v34  ;;  %v1336_v34 = vadd.f32 %v2696_v39, %v2580_v18  ;;  %v1299_v18 = vadd.f32 %v2584_v29, %v2463_v8  ;;  %v1304_v29 = vadd.f32 %v2600_v61, %v2478_v32 }
 0x1d4   : > { %v1440_v44 = vadd.f32 %v1439_v15, %v1271_v41 }
 0x1d6   : > { %1544 = vst [vmem:[%s2460_s29 + $0x128] sm:$0xff] %v1440_v44  ;;  %v1489_v48 = vpop.f32.mrf.mxu3 }
 0x1d7   : > { %v1490_v53 = vadd.f32 %v1489_v48, %v1321_v46 }
 0x1d8   : > { %v1447_v54 = vpop.f32.mrf.mxu2  ;;  %v1104_v43 = vpop.f32.mrf.mxu0 }
 0x1d9   : > { %1564 = vst [vmem:[%s2460_s29 + $0x1c8] sm:$0xff] %v1490_v53  ;;  %v1273_v38 = vpop.f32.mrf.mxu1 }
 0x1da   : > { %v1274_v50 = vadd.f32 %v1273_v38, %v1104_v43 }
 0x1dc   : > { %v1443_v57 = vadd.f32 %v1442_v28, %v1274_v50 }
 0x1de   : > { %1545 = vst [vmem:[%s2460_s29 + $0x130] sm:$0xff] %v1443_v57  ;;  %v1492_v58 = vpop.f32.mrf.mxu3 }
 0x1df   : > { %v1493_v62 = vadd.f32 %v1492_v58, %v1324_v55 }
 0x1e0   : > { %v1449_v0 = vpop.f32.mrf.mxu2  ;;  %v1106_v60 = vpop.f32.mrf.mxu0 }
 0x1e1   : > { %1565 = vst [vmem:[%s2460_s29 + $0x1d0] sm:$0xff] %v1493_v62  ;;  %v1275_v59 = vpop.f32.mrf.mxu1 }
 0x1e2   : > { %v1276_v2 = vadd.f32 %v1275_v59, %v1106_v60  ;;  %v1301_v60 = vadd.f32 %v2596_v49, %v2475_v23 }
 0x1e4   : > { %v1445_v3 = vadd.f32 %v1444_v42, %v1276_v2 }
 0x1e6   : > { %1546 = vst [vmem:[%s2460_s29 + $0x138] sm:$0xff] %v1445_v3  ;;  %v1494_v30 = vpop.f32.mrf.mxu3 }
 0x1e7   : > { %v1495_v9 = vadd.f32 %v1494_v30, %v1326_v56 }
 0x1e8   : > { %v1452_v4 = vpop.f32.mrf.mxu2  ;;  %v1109_v5 = vpop.f32.mrf.mxu0 }
 0x1e9   : > { %1566 = vst [vmem:[%s2460_s29 + $0x1d8] sm:$0xff] %v1495_v9  ;;  %v1278_v11 = vpop.f32.mrf.mxu1 }
 0x1ea   : > { %v1279_v10 = vadd.f32 %v1278_v11, %v1109_v5  ;;  %v1306_v5 = vadd.f32 %v2612_v16, %v2490_v47 }
 0x1ec   : > { %v1448_v12 = vadd.f32 %v1447_v54, %v1279_v10 }
 0x1ee   : > { %1547 = vst [vmem:[%s2460_s29 + $0x140] sm:$0xff] %v1448_v12  ;;  %v1497_v15 = vpop.f32.mrf.mxu3 }
 0x1ef   : > { %v1498_v7 = vadd.f32 %v1497_v15, %v1329_v13 }
 0x1f0   : > { %v1454_v51 = vpop.f32.mrf.mxu2  ;;  %v1111_v24 = vpop.f32.mrf.mxu0 }
 0x1f1   : > { %1567 = vst [vmem:[%s2460_s29 + $0x1e0] sm:$0xff] %v1498_v7  ;;  %v1280_v33 = vpop.f32.mrf.mxu1 }
 0x1f2   : > { %v1281_v14 = vadd.f32 %v1280_v33, %v1111_v24 }
 0x1f4   : > { %v1450_v20 = vadd.f32 %v1449_v0, %v1281_v14 }
 0x1f6   : > { %1548 = vst [vmem:[%s2460_s29 + $0x148] sm:$0xff] %v1450_v20  ;;  %v1499_v25 = vpop.f32.mrf.mxu3 }
 0x1f7   : > { %v1500_v26 = vadd.f32 %v1499_v25, %v1331_v21 }
 0x1f8   : > { %v1457_v28 = vpop.f32.mrf.mxu2  ;;  %v1114_v35 = vpop.f32.mrf.mxu0 }
 0x1f9   : > { %1568 = vst [vmem:[%s2460_s29 + $0x1e8] sm:$0xff] %v1500_v26  ;;  %v1283_v45 = vpop.f32.mrf.mxu1 }
 0x1fa   : > { %v1284_v17 = vadd.f32 %v1283_v45, %v1114_v35 }
 0x1fc   : > { %v1453_v1 = vadd.f32 %v1452_v4, %v1284_v17 }
 0x1fe   : > { %1549 = vst [vmem:[%s2460_s29 + $0x150] sm:$0xff] %v1453_v1  ;;  %v1502_v31 = vpop.f32.mrf.mxu3 }
 0x1ff   : > { %v1503_v36 = vadd.f32 %v1502_v31, %v1334_v27 }
 0x200   : > { %v1459_v37 = vpop.f32.mrf.mxu2  ;;  %v1116_v52 = vpop.f32.mrf.mxu0 }
 0x201   : > { %1569 = vst [vmem:[%s2460_s29 + $0x1f0] sm:$0xff] %v1503_v36  ;;  %v1285_v6 = vpop.f32.mrf.mxu1 }
 0x202   : > { %v1286_v40 = vadd.f32 %v1285_v6, %v1116_v52 }
 0x204   : > { %v1455_v42 = vadd.f32 %v1454_v51, %v1286_v40 }
 0x206   : > { %1550 = vst [vmem:[%s2460_s29 + $0x158] sm:$0xff] %v1455_v42  ;;  %v1504_v22 = vpop.f32.mrf.mxu3 }
 0x207   : > { %v1505_v41 = vadd.f32 %v1504_v22, %v1336_v34 }
 0x208   : > { %v1462_v44 = vpop.f32.mrf.mxu2  ;;  %v1119_v63 = vpop.f32.mrf.mxu0 }
 0x209   : > { %1570 = vst [vmem:[%s2460_s29 + $0x1f8] sm:$0xff] %v1505_v41  ;;  %v1288_v19 = vpop.f32.mrf.mxu1 }
 0x20a   : > { %v1289_v46 = vadd.f32 %v1288_v19, %v1119_v63 }
 0x20c   : > { %v1458_v48 = vadd.f32 %v1457_v28, %v1289_v46 }
 0x20e   : > { %1551 = vst [vmem:[%s2460_s29 + $0x160] sm:$0xff] %v1458_v48 }
 0x210   : > { %v1464_v53 = vpop.f32.mrf.mxu2  ;;  %v1121_v54 = vpop.f32.mrf.mxu0 }
 0x211   : > { %v1290_v43 = vpop.f32.mrf.mxu1 }
 0x212   : > { %v1291_v38 = vadd.f32 %v1290_v43, %v1121_v54 }
 0x214   : > { %v1460_v50 = vadd.f32 %v1459_v37, %v1291_v38 }
 0x216   : > { %1552 = vst [vmem:[%s2460_s29 + $0x168] sm:$0xff] %v1460_v50 }
 0x218   : > { %v1467_v39 = vpop.f32.mrf.mxu2  ;;  %v1124_v57 = vpop.f32.mrf.mxu0 }
 0x219   : > { %v1468_v55 = vadd.f32 %v1467_v39, %v1299_v18  ;;  %v1293_v58 = vpop.f32.mrf.mxu1 }
 0x21a   : > { %v1294_v62 = vadd.f32 %v1293_v58, %v1124_v57 }
 0x21b   : > { %1555 = vst [vmem:[%s2460_s29 + $0x180] sm:$0xff] %v1468_v55 }
 0x21c   : > { %v1463_v0 = vadd.f32 %v1462_v44, %v1294_v62 }
 0x21e   : > { %1553 = vst [vmem:[%s2460_s29 + $0x170] sm:$0xff] %v1463_v0 }
 0x220   : > { %v1469_v59 = vpop.f32.mrf.mxu2  ;;  %v1126_v2 = vpop.f32.mrf.mxu0 }
 0x221   : > { %v1470_v3 = vadd.f32 %v1469_v59, %v1301_v60  ;;  %v1295_v56 = vpop.f32.mrf.mxu1 }
 0x222   : > { %v1296_v30 = vadd.f32 %v1295_v56, %v1126_v2 }
 0x223   : > { %1556 = vst [vmem:[%s2460_s29 + $0x188] sm:$0xff] %v1470_v3 }
 0x224   : > { %v1465_v8 = vadd.f32 %v1464_v53, %v1296_v30 }
 0x226   : > { %1554 = vst [vmem:[%s2460_s29 + $0x178] sm:$0xff] %v1465_v8 }
 0x228   : > { %v1472_v9 = vpop.f32.mrf.mxu2 }
 0x229   : > { %v1473_v4 = vadd.f32 %v1472_v9, %v1304_v29 }
 0x22b   : > { %1557 = vst [vmem:[%s2460_s29 + $0x190] sm:$0xff] %v1473_v4 }
 0x230   : > { %v1474_v11 = vpop.f32.mrf.mxu2 }
 0x231   : > { %v1475_v23 = vadd.f32 %v1474_v11, %v1306_v5 }
 0x233   : > { %1558 = vst [vmem:[%s2460_s29 + $0x198] sm:$0xff] %v1475_v23 }
 0x234 PF: > { %s12_s9 = sadd.s32 1, %s2273_s9  }
 0x235   : > { %p9_p4 = scmp.ge.s32.totalorder %s12_s9, 6  }
 0x237   :  { %11 = sbr.rel (!%p9_p4) target bundleno = 1 (0x1), region = 58 }

</bundles_post_ra>
